<compile_context>
chip_gen: v7x
topology: tpu7x:2x2x1
jax: 0.10.0
libtpu: 0.0.40
codegen_flags: <defaults>
</compile_context>

<pallas_src>
import functools
import math

import jax
import jax.numpy as jnp
from jax import lax
from jax.experimental import pallas as pl
from jax.experimental.pallas import tpu as pltpu

# Keep the plain-JAX reference and the in-kernel f32 MXU dots at the same full
# precision so the correctness check below is meaningful.
jax.config.update("jax_default_matmul_precision", "highest")

# Explicit scoped-VMEM budget: fits v7x (64 MiB physical) and raises the 16 MiB
# default on v5e so the resident projection weights keep working.
_VMEM_LIMIT_BYTES = 48 * 1024 * 1024

# (tq, dk) x (tk, dk) -> (tq, tk): contract last dim of both operands (A @ B^T).
_TRANS_B_DIMS = (((1,), (1,)), ((), ()))


def _pick_tile(dim, max_tile):
    """Use the full dim if it fits, otherwise a 128-multiple tile (ragged tail clipped)."""
    return dim if dim <= max_tile else max_tile


# ---------------------------------------------------------------------------
# Fused Q/K/V projection: one grid, resident (stacked, pre-transposed) weights,
# head-split (bs, heads, S, d_k) outputs written straight from the kernel.
# ---------------------------------------------------------------------------
def _qkv_proj_kernel(xq_ref, xk_ref, xv_ref, w_ref, b_ref,
                     q_ref, k_ref, v_ref, *, heads, d_k):
    # w_ref: (3, d_model, d_model) resident (already transposed: y = x @ w)
    # b_ref: (3, 1, d_model) resident, f32
    def proj(x_ref, idx):
        y = jnp.dot(x_ref[...], w_ref[idx],
                    preferred_element_type=jnp.float32) + b_ref[idx]
        return y.astype(q_ref.dtype)

    yq = proj(xq_ref, 0)          # (tS, d_model)
    yk = proj(xk_ref, 1)
    yv = proj(xv_ref, 2)

    # Head split via static lane slices -> no wrapper HBM transpose.
    for h in range(heads):
        sl = slice(h * d_k, (h + 1) * d_k)
        q_ref[h] = yq[:, sl]
        k_ref[h] = yk[:, sl]
        v_ref[h] = yv[:, sl]


def qkv_projection(xq, xk, xv, wqkv_t, bqkv, heads, *, max_tile=512):
    bs, S, d_model = xq.shape
    d_k = d_model // heads
    tS = _pick_tile(S, max_tile)
    grid = (bs, pl.cdiv(S, tS))
    kernel = functools.partial(_qkv_proj_kernel, heads=heads, d_k=d_k)

    head_shape = jax.ShapeDtypeStruct((bs, heads, S, d_k), xq.dtype)
    x_spec = pl.BlockSpec((None, tS, d_model), lambda b, s: (b, s, 0))
    head_spec = pl.BlockSpec((None, heads, tS, d_k), lambda b, s: (b, 0, s, 0))

    return pl.pallas_call(
        kernel,
        out_shape=(head_shape, head_shape, head_shape),
        grid_spec=pltpu.PrefetchScalarGridSpec(
            num_scalar_prefetch=0,
            grid=grid,
            in_specs=[
                x_spec, x_spec, x_spec,
                pl.BlockSpec((3, d_model, d_model), lambda b, s: (0, 0, 0)),
                pl.BlockSpec((3, 1, d_model), lambda b, s: (0, 0, 0)),
            ],
            out_specs=[head_spec, head_spec, head_spec],
        ),
        compiler_params=pltpu.CompilerParams(
            dimension_semantics=("parallel", "parallel"),
            vmem_limit_bytes=_VMEM_LIMIT_BYTES),
    )(xq, xk, xv, wqkv_t, bqkv)


# ---------------------------------------------------------------------------
# Flash-style attention core: grid (bs, heads, q_tiles, kv_tiles), online
# softmax with m/l/acc VMEM scratch (kv axis is the "arbitrary" reduction).
# ---------------------------------------------------------------------------
def _flash_attn_kernel(q_ref, k_ref, v_ref, mcol_ref, mrow_ref, o_ref,
                       m_sc, l_sc, acc_sc, *,
                       scale, kv_len, block_k, bounds_check):
    ki = pl.program_id(3)

    @pl.when(ki == 0)
    def _init():
        m_sc[...] = jnp.full(m_sc.shape, -jnp.inf, m_sc.dtype)
        l_sc[...] = jnp.zeros(l_sc.shape, l_sc.dtype)
        acc_sc[...] = jnp.zeros(acc_sc.shape, acc_sc.dtype)

    # Fold 1/sqrt(d_k) into the (tq, d_k) q tile (tq*d_k mults, not tq*tk).
    q = q_ref[...] * scale
    s = lax.dot_general(q, k_ref[...], _TRANS_B_DIMS,
                        preferred_element_type=jnp.float32)        # (tq, tk)

    # torch: scores.masked_fill(mask_q ⊗ mask_k == 0, -1e9); outer product is
    # formed in-kernel from two 1-D mask slices (no dense (S, S) mask in HBM).
    outer = mcol_ref[...] * mrow_ref[...]                           # (tq, tk)
    s = jnp.where(outer == 0.0, -1e9, s)

    if bounds_check:  # ragged last kv tile: drop out-of-range key columns
        col = lax.broadcasted_iota(jnp.int32, s.shape, 1) + ki * block_k
        s = jnp.where(col < kv_len, s, -jnp.inf)

    m_prev = m_sc[...]
    m_new = jnp.maximum(m_prev, jnp.max(s, axis=-1, keepdims=True))
    alpha = jnp.exp(m_prev - m_new)
    p = jnp.exp(s - m_new)                                          # f32 stats
    l_sc[...] = alpha * l_sc[...] + jnp.sum(p, axis=-1, keepdims=True)
    acc_sc[...] = alpha * acc_sc[...] + jnp.dot(
        p.astype(v_ref.dtype), v_ref[...], preferred_element_type=jnp.float32)
    m_sc[...] = m_new

    @pl.when(ki == pl.num_programs(3) - 1)
    def _finalize():
        inv = pl.reciprocal(l_sc[...], approx=True)   # EUP slot, ~free
        o_ref[...] = (acc_sc[...] * inv).astype(o_ref.dtype)


def flash_attention(qh, kh, vh, mcol, mrow, d_k, *, max_tile=256):
    bs, heads, S, dk = qh.shape
    tq = _pick_tile(S, max_tile)
    tk = _pick_tile(S, max_tile)
    grid = (bs, heads, pl.cdiv(S, tq), pl.cdiv(S, tk))
    kernel = functools.partial(
        _flash_attn_kernel,
        scale=1.0 / math.sqrt(d_k),
        kv_len=S, block_k=tk, bounds_check=(S % tk != 0))

    return pl.pallas_call(
        kernel,
        out_shape=jax.ShapeDtypeStruct((bs, heads, S, dk), qh.dtype),
        grid_spec=pltpu.PrefetchScalarGridSpec(
            num_scalar_prefetch=0,
            grid=grid,
            in_specs=[
                pl.BlockSpec((None, None, tq, dk),
                             lambda b, h, qi, ki: (b, h, qi, 0)),
                pl.BlockSpec((None, None, tk, dk),
                             lambda b, h, qi, ki: (b, h, ki, 0)),
                pl.BlockSpec((None, None, tk, dk),
                             lambda b, h, qi, ki: (b, h, ki, 0)),
                pl.BlockSpec((None, tq, 1), lambda b, h, qi, ki: (b, qi, 0)),
                pl.BlockSpec((None, 1, tk), lambda b, h, qi, ki: (b, 0, ki)),
            ],
            out_specs=pl.BlockSpec((None, None, tq, dk),
                                   lambda b, h, qi, ki: (b, h, qi, 0)),
            scratch_shapes=[
                pltpu.VMEM((tq, 1), jnp.float32),    # running max
                pltpu.VMEM((tq, 1), jnp.float32),    # running denom
                pltpu.VMEM((tq, dk), jnp.float32),   # output accumulator
            ],
        ),
        compiler_params=pltpu.CompilerParams(
            dimension_semantics=("parallel", "parallel", "parallel", "arbitrary"),
            vmem_limit_bytes=_VMEM_LIMIT_BYTES),
    )(qh, kh, vh, mcol, mrow)


# ---------------------------------------------------------------------------
# Output projection: consumes (bs, heads, S, d_k) directly (per-head matmuls
# accumulated in f32 against resident W_o^T) and writes lane-dense
# (bs, S, d_model) -- no concat transpose/reshape in the wrapper.
# ---------------------------------------------------------------------------
def _out_proj_kernel(a_ref, w_ref, b_ref, o_ref, *, heads, d_k):
    tS = a_ref.shape[1]
    d_model = w_ref.shape[1]
    acc = jnp.zeros((tS, d_model), jnp.float32)
    for h in range(heads):
        acc = acc + jnp.dot(a_ref[h], w_ref[h * d_k:(h + 1) * d_k, :],
                            preferred_element_type=jnp.float32)
    o_ref[...] = (acc + b_ref[...]).astype(o_ref.dtype)


def out_projection(attn, wo_t, bo, heads, *, max_tile=512):
    bs, h, S, d_k = attn.shape
    d_model = h * d_k
    tS = _pick_tile(S, max_tile)
    grid = (bs, pl.cdiv(S, tS))
    kernel = functools.partial(_out_proj_kernel, heads=heads, d_k=d_k)
    return pl.pallas_call(
        kernel,
        out_shape=jax.ShapeDtypeStruct((bs, S, d_model), attn.dtype),
        grid_spec=pltpu.PrefetchScalarGridSpec(
            num_scalar_prefetch=0,
            grid=grid,
            in_specs=[
                pl.BlockSpec((None, heads, tS, d_k), lambda b, s: (b, 0, s, 0)),
                pl.BlockSpec((d_model, d_model), lambda b, s: (0, 0)),
                pl.BlockSpec((1, d_model), lambda b, s: (0, 0)),
            ],
            out_specs=pl.BlockSpec((None, tS, d_model), lambda b, s: (b, s, 0)),
        ),
        compiler_params=pltpu.CompilerParams(
            dimension_semantics=("parallel", "parallel"),
            vmem_limit_bytes=_VMEM_LIMIT_BYTES),
    )(attn, wo_t, bo)


# ---------------------------------------------------------------------------
# Param prep (done ONCE, not per call): store W^T / stacked QKV weights so no
# per-call weight transposes and a single resident weight slab per kernel.
# ---------------------------------------------------------------------------
def prepare_params(params):
    wqkv_t = jnp.stack([params['wq'].T, params['wk'].T, params['wv'].T])  # (3,D,D)
    bqkv = jnp.stack([params['bq'], params['bk'], params['bv']])
    return {
        'wqkv_t': wqkv_t,
        'bqkv': bqkv[:, None, :].astype(jnp.float32),                     # (3,1,D)
        'wo_t': params['wo'].T,
        'bo': params['bo'].reshape(1, -1).astype(jnp.float32),
    }


# ---------------------------------------------------------------------------
# Full MultiHeadAttention forward (matches the PyTorch module, eval mode).
# ---------------------------------------------------------------------------
def multi_head_attention(q, k, v, prepared, heads, mask=None):
    bs, S, d_model = q.shape
    d_k = d_model // heads

    qh, kh, vh = qkv_projection(q, k, v, prepared['wqkv_t'], prepared['bqkv'],
                                heads)

    if mask is None:
        m = jnp.ones((bs, S), dtype=jnp.float32)
    else:
        m = mask.astype(jnp.float32)
    mcol = m.reshape(bs, S, 1)     # query-side mask column
    mrow = m.reshape(bs, 1, S)     # key-side mask row

    # TODO(synk): nn.Dropout(0.1) on the attention probabilities is omitted
    # (identity in eval/inference mode).
    attn = flash_attention(qh, kh, vh, mcol, mrow, d_k)    # (bs, h, S, d_k)
    return out_projection(attn, prepared['wo_t'], prepared['bo'], heads)


# ---------------------------------------------------------------------------
# Pure-JAX reference (mirrors the PyTorch forward exactly).
# ---------------------------------------------------------------------------
def _reference_mha(q, k, v, params, heads, mask=None):
    bs, seq, d_model = q.shape
    d_k = d_model // heads

    def lin(x, w, b):
        return x @ w.T + b

    def split_heads(x):
        return jnp.transpose(x.reshape(bs, seq, heads, d_k), (0, 2, 1, 3))

    qh = split_heads(lin(q, params['wq'], params['bq']))
    kh = split_heads(lin(k, params['wk'], params['bk']))
    vh = split_heads(lin(v, params['wv'], params['bv']))

    scores = jnp.einsum('bhqd,bhkd->bhqk', qh, kh) / math.sqrt(d_k)
    if mask is not None:
        m = mask.astype(jnp.float32)
        outer = (m[:, :, None] * m[:, None, :])[:, None, :, :]
        scores = jnp.where(outer == 0.0, -1e9, scores)
    probs = jax.nn.softmax(scores, axis=-1)
    out = jnp.einsum('bhqk,bhkd->bhqd', probs, vh)
    concat = jnp.transpose(out, (0, 2, 1, 3)).reshape(bs, seq, d_model)
    return lin(concat, params['wo'], params['bo'])


if __name__ == "__main__":
    key = jax.random.PRNGKey(0)
    batch, seq, d_model, heads = 2, 8, 32, 4
    ks = jax.random.split(key, 11)

    q = jax.random.normal(ks[0], (batch, seq, d_model), dtype=jnp.float32)
    k = jax.random.normal(ks[1], (batch, seq, d_model), dtype=jnp.float32)
    v = jax.random.normal(ks[2], (batch, seq, d_model), dtype=jnp.float32)

    wscale = 1.0 / math.sqrt(d_model)
    params = {
        'wq': jax.random.normal(ks[3], (d_model, d_model), jnp.float32) * wscale,
        'bq': jax.random.normal(ks[4], (d_model,), jnp.float32) * wscale,
        'wk': jax.random.normal(ks[5], (d_model, d_model), jnp.float32) * wscale,
        'bk': jax.random.normal(ks[6], (d_model,), jnp.float32) * wscale,
        'wv': jax.random.normal(ks[7], (d_model, d_model), jnp.float32) * wscale,
        'bv': jax.random.normal(ks[8], (d_model,), jnp.float32) * wscale,
        'wo': jax.random.normal(ks[9], (d_model, d_model), jnp.float32) * wscale,
        'bo': jax.random.normal(ks[10], (d_model,), jnp.float32) * wscale,
    }
    prepared = prepare_params(params)

    # Padding mask: batch 0 fully visible; batch 1 masks the last 2 positions.
    mask = jnp.array([[1.0] * seq,
                      [1.0] * (seq - 2) + [0.0, 0.0]], dtype=jnp.float32)

    y = multi_head_attention(q, k, v, prepared, heads, mask=mask)
    jax.block_until_ready(y)

    ref = _reference_mha(q, k, v, params, heads, mask=mask)
    assert y.shape == ref.shape
    # Tolerance includes headroom for the EUP approximate reciprocal in the
    # softmax finalize (everything else runs in full f32).
    assert jnp.allclose(y, ref, atol=2e-3, rtol=2e-3), float(
        jnp.max(jnp.abs(y - ref)))

    print("KERNEL_OK")
</pallas_src>

<mosaic_0001>
module attributes {stable_mosaic.version = 11 : i64} {
  func.func @_qkv_proj_kernel(%arg0: i32, %arg1: i32, %arg2: memref<1x8x32xf32, #tpu.memory_space<vmem>>, %arg3: memref<1x8x32xf32, #tpu.memory_space<vmem>>, %arg4: memref<1x8x32xf32, #tpu.memory_space<vmem>>, %arg5: memref<3x32x32xf32, #tpu.memory_space<vmem>>, %arg6: memref<3x1x32xf32, #tpu.memory_space<vmem>>, %arg7: memref<1x4x8x8xf32, #tpu.memory_space<vmem>>, %arg8: memref<1x4x8x8xf32, #tpu.memory_space<vmem>>, %arg9: memref<1x4x8x8xf32, #tpu.memory_space<vmem>>) attributes {dimension_semantics = [#tpu.dimension_semantics<parallel>, #tpu.dimension_semantics<parallel>], iteration_bounds = array<i64: 2, 1>, scalar_prefetch = 0 : i64, scratch_operands = 0 : i64, tpu.core_type = #tpu.core_type<tc>, window_params = [{transform_indices = @transform_0, window_bounds = array<i64: 1, 8, 32>}, {transform_indices = @transform_1, window_bounds = array<i64: 1, 8, 32>}, {transform_indices = @transform_2, window_bounds = array<i64: 1, 8, 32>}, {pipeline_mode = #tpu.pipeline_mode<synchronous>, transform_indices = @transform_3, window_bounds = array<i64: 3, 32, 32>}, {pipeline_mode = #tpu.pipeline_mode<synchronous>, transform_indices = @transform_4, window_bounds = array<i64: 3, 1, 32>}, {transform_indices = @transform_5, window_bounds = array<i64: 1, 4, 8, 8>}, {transform_indices = @transform_6, window_bounds = array<i64: 1, 4, 8, 8>}, {transform_indices = @transform_7, window_bounds = array<i64: 1, 4, 8, 8>}]} {
    %c0 = arith.constant 0 : index
    %c0_0 = arith.constant 0 : index
    %c0_1 = arith.constant 0 : index
    %0 = vector.load %arg2[%c0, %c0_0, %c0_1] : memref<1x8x32xf32, #tpu.memory_space<vmem>>, vector<1x8x32xf32>
    %1 = vector.shape_cast %0 : vector<1x8x32xf32> to vector<8x32xf32>
    %c0_2 = arith.constant 0 : index
    %c0_3 = arith.constant 0 : index
    %c0_4 = arith.constant 0 : index
    %2 = vector.load %arg5[%c0_2, %c0_3, %c0_4] : memref<3x32x32xf32, #tpu.memory_space<vmem>>, vector<1x32x32xf32>
    %3 = vector.shape_cast %2 : vector<1x32x32xf32> to vector<32x32xf32>
    %cst = arith.constant dense<0.000000e+00> : vector<8x32xf32>
    %4 = tpu.matmul %1, %3, %cst {dimension_numbers = #tpu.dot_dimension_numbers<[1], [0], [0], [1], [0, 0, 1, 1], [], []>, precision = #tpu.contract_precision<fp32>} : vector<8x32xf32>, vector<32x32xf32>, vector<8x32xf32> -> vector<8x32xf32>
    %c0_5 = arith.constant 0 : index
    %c0_6 = arith.constant 0 : index
    %c0_7 = arith.constant 0 : index
    %5 = vector.load %arg6[%c0_5, %c0_6, %c0_7] : memref<3x1x32xf32, #tpu.memory_space<vmem>>, vector<1x1x32xf32>
    %6 = vector.shape_cast %5 : vector<1x1x32xf32> to vector<1x32xf32>
    %7 = vector.broadcast %6 : vector<1x32xf32> to vector<8x32xf32>
    %8 = arith.addf %4, %7 : vector<8x32xf32>
    %c0_8 = arith.constant 0 : index
    %c0_9 = arith.constant 0 : index
    %c0_10 = arith.constant 0 : index
    %9 = vector.load %arg3[%c0_8, %c0_9, %c0_10] : memref<1x8x32xf32, #tpu.memory_space<vmem>>, vector<1x8x32xf32>
    %10 = vector.shape_cast %9 : vector<1x8x32xf32> to vector<8x32xf32>
    %c1 = arith.constant 1 : index
    %c0_11 = arith.constant 0 : index
    %c0_12 = arith.constant 0 : index
    %11 = vector.load %arg5[%c1, %c0_11, %c0_12] : memref<3x32x32xf32, #tpu.memory_space<vmem>>, vector<1x32x32xf32>
    %12 = vector.shape_cast %11 : vector<1x32x32xf32> to vector<32x32xf32>
    %cst_13 = arith.constant dense<0.000000e+00> : vector<8x32xf32>
    %13 = tpu.matmul %10, %12, %cst_13 {dimension_numbers = #tpu.dot_dimension_numbers<[1], [0], [0], [1], [0, 0, 1, 1], [], []>, precision = #tpu.contract_precision<fp32>} : vector<8x32xf32>, vector<32x32xf32>, vector<8x32xf32> -> vector<8x32xf32>
    %c1_14 = arith.constant 1 : index
    %c0_15 = arith.constant 0 : index
    %c0_16 = arith.constant 0 : index
    %14 = vector.load %arg6[%c1_14, %c0_15, %c0_16] : memref<3x1x32xf32, #tpu.memory_space<vmem>>, vector<1x1x32xf32>
    %15 = vector.shape_cast %14 : vector<1x1x32xf32> to vector<1x32xf32>
    %16 = vector.broadcast %15 : vector<1x32xf32> to vector<8x32xf32>
    %17 = arith.addf %13, %16 : vector<8x32xf32>
    %c0_17 = arith.constant 0 : index
    %c0_18 = arith.constant 0 : index
    %c0_19 = arith.constant 0 : index
    %18 = vector.load %arg4[%c0_17, %c0_18, %c0_19] : memref<1x8x32xf32, #tpu.memory_space<vmem>>, vector<1x8x32xf32>
    %19 = vector.shape_cast %18 : vector<1x8x32xf32> to vector<8x32xf32>
    %c2 = arith.constant 2 : index
    %c0_20 = arith.constant 0 : index
    %c0_21 = arith.constant 0 : index
    %20 = vector.load %arg5[%c2, %c0_20, %c0_21] : memref<3x32x32xf32, #tpu.memory_space<vmem>>, vector<1x32x32xf32>
    %21 = vector.shape_cast %20 : vector<1x32x32xf32> to vector<32x32xf32>
    %cst_22 = arith.constant dense<0.000000e+00> : vector<8x32xf32>
    %22 = tpu.matmul %19, %21, %cst_22 {dimension_numbers = #tpu.dot_dimension_numbers<[1], [0], [0], [1], [0, 0, 1, 1], [], []>, precision = #tpu.contract_precision<fp32>} : vector<8x32xf32>, vector<32x32xf32>, vector<8x32xf32> -> vector<8x32xf32>
    %c2_23 = arith.constant 2 : index
    %c0_24 = arith.constant 0 : index
    %c0_25 = arith.constant 0 : index
    %23 = vector.load %arg6[%c2_23, %c0_24, %c0_25] : memref<3x1x32xf32, #tpu.memory_space<vmem>>, vector<1x1x32xf32>
    %24 = vector.shape_cast %23 : vector<1x1x32xf32> to vector<1x32xf32>
    %25 = vector.broadcast %24 : vector<1x32xf32> to vector<8x32xf32>
    %26 = arith.addf %22, %25 : vector<8x32xf32>
    %27 = vector.extract_strided_slice %8 {offsets = [0, 0], sizes = [8, 8], strides = [1, 1]} : vector<8x32xf32> to vector<8x8xf32>
    %c0_26 = arith.constant 0 : index
    %c0_27 = arith.constant 0 : index
    %c0_28 = arith.constant 0 : index
    %c0_29 = arith.constant 0 : index
    %28 = vector.load %arg7[%c0_26, %c0_27, %c0_28, %c0_29] : memref<1x4x8x8xf32, #tpu.memory_space<vmem>>, vector<1x1x8x8xf32>
    %29 = vector.shape_cast %28 : vector<1x1x8x8xf32> to vector<8x8xf32>
    %30 = vector.shape_cast %27 : vector<8x8xf32> to vector<1x1x8x8xf32>
    tpu.vector_store %arg7[%c0_26, %c0_27, %c0_28, %c0_29], %30 {strides = array<i32>} : memref<1x4x8x8xf32, #tpu.memory_space<vmem>>, vector<1x1x8x8xf32>,
    %31 = vector.extract_strided_slice %17 {offsets = [0, 0], sizes = [8, 8], strides = [1, 1]} : vector<8x32xf32> to vector<8x8xf32>
    %c0_30 = arith.constant 0 : index
    %c0_31 = arith.constant 0 : index
    %c0_32 = arith.constant 0 : index
    %c0_33 = arith.constant 0 : index
    %32 = vector.load %arg8[%c0_30, %c0_31, %c0_32, %c0_33] : memref<1x4x8x8xf32, #tpu.memory_space<vmem>>, vector<1x1x8x8xf32>
    %33 = vector.shape_cast %32 : vector<1x1x8x8xf32> to vector<8x8xf32>
    %34 = vector.shape_cast %31 : vector<8x8xf32> to vector<1x1x8x8xf32>
    tpu.vector_store %arg8[%c0_30, %c0_31, %c0_32, %c0_33], %34 {strides = array<i32>} : memref<1x4x8x8xf32, #tpu.memory_space<vmem>>, vector<1x1x8x8xf32>,
    %35 = vector.extract_strided_slice %26 {offsets = [0, 0], sizes = [8, 8], strides = [1, 1]} : vector<8x32xf32> to vector<8x8xf32>
    %c0_34 = arith.constant 0 : index
    %c0_35 = arith.constant 0 : index
    %c0_36 = arith.constant 0 : index
    %c0_37 = arith.constant 0 : index
    %36 = vector.load %arg9[%c0_34, %c0_35, %c0_36, %c0_37] : memref<1x4x8x8xf32, #tpu.memory_space<vmem>>, vector<1x1x8x8xf32>
    %37 = vector.shape_cast %36 : vector<1x1x8x8xf32> to vector<8x8xf32>
    %38 = vector.shape_cast %35 : vector<8x8xf32> to vector<1x1x8x8xf32>
    tpu.vector_store %arg9[%c0_34, %c0_35, %c0_36, %c0_37], %38 {strides = array<i32>} : memref<1x4x8x8xf32, #tpu.memory_space<vmem>>, vector<1x1x8x8xf32>,
    %39 = vector.extract_strided_slice %8 {offsets = [0, 8], sizes = [8, 8], strides = [1, 1]} : vector<8x32xf32> to vector<8x8xf32>
    %c0_38 = arith.constant 0 : index
    %c1_39 = arith.constant 1 : index
    %c0_40 = arith.constant 0 : index
    %c0_41 = arith.constant 0 : index
    %40 = vector.load %arg7[%c0_38, %c1_39, %c0_40, %c0_41] : memref<1x4x8x8xf32, #tpu.memory_space<vmem>>, vector<1x1x8x8xf32>
    %41 = vector.shape_cast %40 : vector<1x1x8x8xf32> to vector<8x8xf32>
    %42 = vector.shape_cast %39 : vector<8x8xf32> to vector<1x1x8x8xf32>
    tpu.vector_store %arg7[%c0_38, %c1_39, %c0_40, %c0_41], %42 {strides = array<i32>} : memref<1x4x8x8xf32, #tpu.memory_space<vmem>>, vector<1x1x8x8xf32>,
    %43 = vector.extract_strided_slice %17 {offsets = [0, 8], sizes = [8, 8], strides = [1, 1]} : vector<8x32xf32> to vector<8x8xf32>
    %c0_42 = arith.constant 0 : index
    %c1_43 = arith.constant 1 : index
    %c0_44 = arith.constant 0 : index
    %c0_45 = arith.constant 0 : index
    %44 = vector.load %arg8[%c0_42, %c1_43, %c0_44, %c0_45] : memref<1x4x8x8xf32, #tpu.memory_space<vmem>>, vector<1x1x8x8xf32>
    %45 = vector.shape_cast %44 : vector<1x1x8x8xf32> to vector<8x8xf32>
    %46 = vector.shape_cast %43 : vector<8x8xf32> to vector<1x1x8x8xf32>
    tpu.vector_store %arg8[%c0_42, %c1_43, %c0_44, %c0_45], %46 {strides = array<i32>} : memref<1x4x8x8xf32, #tpu.memory_space<vmem>>, vector<1x1x8x8xf32>,
    %47 = vector.extract_strided_slice %26 {offsets = [0, 8], sizes = [8, 8], strides = [1, 1]} : vector<8x32xf32> to vector<8x8xf32>
    %c0_46 = arith.constant 0 : index
    %c1_47 = arith.constant 1 : index
    %c0_48 = arith.constant 0 : index
    %c0_49 = arith.constant 0 : index
    %48 = vector.load %arg9[%c0_46, %c1_47, %c0_48, %c0_49] : memref<1x4x8x8xf32, #tpu.memory_space<vmem>>, vector<1x1x8x8xf32>
    %49 = vector.shape_cast %48 : vector<1x1x8x8xf32> to vector<8x8xf32>
    %50 = vector.shape_cast %47 : vector<8x8xf32> to vector<1x1x8x8xf32>
    tpu.vector_store %arg9[%c0_46, %c1_47, %c0_48, %c0_49], %50 {strides = array<i32>} : memref<1x4x8x8xf32, #tpu.memory_space<vmem>>, vector<1x1x8x8xf32>,
    %51 = vector.extract_strided_slice %8 {offsets = [0, 16], sizes = [8, 8], strides = [1, 1]} : vector<8x32xf32> to vector<8x8xf32>
    %c0_50 = arith.constant 0 : index
    %c2_51 = arith.constant 2 : index
    %c0_52 = arith.constant 0 : index
    %c0_53 = arith.constant 0 : index
    %52 = vector.load %arg7[%c0_50, %c2_51, %c0_52, %c0_53] : memref<1x4x8x8xf32, #tpu.memory_space<vmem>>, vector<1x1x8x8xf32>
    %53 = vector.shape_cast %52 : vector<1x1x8x8xf32> to vector<8x8xf32>
    %54 = vector.shape_cast %51 : vector<8x8xf32> to vector<1x1x8x8xf32>
    tpu.vector_store %arg7[%c0_50, %c2_51, %c0_52, %c0_53], %54 {strides = array<i32>} : memref<1x4x8x8xf32, #tpu.memory_space<vmem>>, vector<1x1x8x8xf32>,
    %55 = vector.extract_strided_slice %17 {offsets = [0, 16], sizes = [8, 8], strides = [1, 1]} : vector<8x32xf32> to vector<8x8xf32>
    %c0_54 = arith.constant 0 : index
    %c2_55 = arith.constant 2 : index
    %c0_56 = arith.constant 0 : index
    %c0_57 = arith.constant 0 : index
    %56 = vector.load %arg8[%c0_54, %c2_55, %c0_56, %c0_57] : memref<1x4x8x8xf32, #tpu.memory_space<vmem>>, vector<1x1x8x8xf32>
    %57 = vector.shape_cast %56 : vector<1x1x8x8xf32> to vector<8x8xf32>
    %58 = vector.shape_cast %55 : vector<8x8xf32> to vector<1x1x8x8xf32>
    tpu.vector_store %arg8[%c0_54, %c2_55, %c0_56, %c0_57], %58 {strides = array<i32>} : memref<1x4x8x8xf32, #tpu.memory_space<vmem>>, vector<1x1x8x8xf32>,
    %59 = vector.extract_strided_slice %26 {offsets = [0, 16], sizes = [8, 8], strides = [1, 1]} : vector<8x32xf32> to vector<8x8xf32>
    %c0_58 = arith.constant 0 : index
    %c2_59 = arith.constant 2 : index
    %c0_60 = arith.constant 0 : index
    %c0_61 = arith.constant 0 : index
    %60 = vector.load %arg9[%c0_58, %c2_59, %c0_60, %c0_61] : memref<1x4x8x8xf32, #tpu.memory_space<vmem>>, vector<1x1x8x8xf32>
    %61 = vector.shape_cast %60 : vector<1x1x8x8xf32> to vector<8x8xf32>
    %62 = vector.shape_cast %59 : vector<8x8xf32> to vector<1x1x8x8xf32>
    tpu.vector_store %arg9[%c0_58, %c2_59, %c0_60, %c0_61], %62 {strides = array<i32>} : memref<1x4x8x8xf32, #tpu.memory_space<vmem>>, vector<1x1x8x8xf32>,
    %63 = vector.extract_strided_slice %8 {offsets = [0, 24], sizes = [8, 8], strides = [1, 1]} : vector<8x32xf32> to vector<8x8xf32>
    %c0_62 = arith.constant 0 : index
    %c3 = arith.constant 3 : index
    %c0_63 = arith.constant 0 : index
    %c0_64 = arith.constant 0 : index
    %64 = vector.load %arg7[%c0_62, %c3, %c0_63, %c0_64] : memref<1x4x8x8xf32, #tpu.memory_space<vmem>>, vector<1x1x8x8xf32>
    %65 = vector.shape_cast %64 : vector<1x1x8x8xf32> to vector<8x8xf32>
    %66 = vector.shape_cast %63 : vector<8x8xf32> to vector<1x1x8x8xf32>
    tpu.vector_store %arg7[%c0_62, %c3, %c0_63, %c0_64], %66 {strides = array<i32>} : memref<1x4x8x8xf32, #tpu.memory_space<vmem>>, vector<1x1x8x8xf32>,
    %67 = vector.extract_strided_slice %17 {offsets = [0, 24], sizes = [8, 8], strides = [1, 1]} : vector<8x32xf32> to vector<8x8xf32>
    %c0_65 = arith.constant 0 : index
    %c3_66 = arith.constant 3 : index
    %c0_67 = arith.constant 0 : index
    %c0_68 = arith.constant 0 : index
    %68 = vector.load %arg8[%c0_65, %c3_66, %c0_67, %c0_68] : memref<1x4x8x8xf32, #tpu.memory_space<vmem>>, vector<1x1x8x8xf32>
    %69 = vector.shape_cast %68 : vector<1x1x8x8xf32> to vector<8x8xf32>
    %70 = vector.shape_cast %67 : vector<8x8xf32> to vector<1x1x8x8xf32>
    tpu.vector_store %arg8[%c0_65, %c3_66, %c0_67, %c0_68], %70 {strides = array<i32>} : memref<1x4x8x8xf32, #tpu.memory_space<vmem>>, vector<1x1x8x8xf32>,
    %71 = vector.extract_strided_slice %26 {offsets = [0, 24], sizes = [8, 8], strides = [1, 1]} : vector<8x32xf32> to vector<8x8xf32>
    %c0_69 = arith.constant 0 : index
    %c3_70 = arith.constant 3 : index
    %c0_71 = arith.constant 0 : index
    %c0_72 = arith.constant 0 : index
    %72 = vector.load %arg9[%c0_69, %c3_70, %c0_71, %c0_72] : memref<1x4x8x8xf32, #tpu.memory_space<vmem>>, vector<1x1x8x8xf32>
    %73 = vector.shape_cast %72 : vector<1x1x8x8xf32> to vector<8x8xf32>
    %74 = vector.shape_cast %71 : vector<8x8xf32> to vector<1x1x8x8xf32>
    tpu.vector_store %arg9[%c0_69, %c3_70, %c0_71, %c0_72], %74 {strides = array<i32>} : memref<1x4x8x8xf32, #tpu.memory_space<vmem>>, vector<1x1x8x8xf32>,
    return
  }
  func.func @transform_0(%arg0: i32, %arg1: i32) -> (i32, i32, i32) {
    %c0_i32 = arith.constant 0 : i32
    %c0_i32_0 = arith.constant 0 : i32
    return %arg0, %arg1, %c0_i32 : i32, i32, i32
  }
  func.func @transform_1(%arg0: i32, %arg1: i32) -> (i32, i32, i32) {
    %c0_i32 = arith.constant 0 : i32
    %c0_i32_0 = arith.constant 0 : i32
    return %arg0, %arg1, %c0_i32 : i32, i32, i32
  }
  func.func @transform_2(%arg0: i32, %arg1: i32) -> (i32, i32, i32) {
    %c0_i32 = arith.constant 0 : i32
    %c0_i32_0 = arith.constant 0 : i32
    return %arg0, %arg1, %c0_i32 : i32, i32, i32
  }
  func.func @transform_3(%arg0: i32, %arg1: i32) -> (i32, i32, i32) {
    %c0_i32 = arith.constant 0 : i32
    %c0_i32_0 = arith.constant 0 : i32
    %c0_i32_1 = arith.constant 0 : i32
    %c0_i32_2 = arith.constant 0 : i32
    return %c0_i32, %c0_i32_0, %c0_i32_1 : i32, i32, i32
  }
  func.func @transform_4(%arg0: i32, %arg1: i32) -> (i32, i32, i32) {
    %c0_i32 = arith.constant 0 : i32
    %c0_i32_0 = arith.constant 0 : i32
    %c0_i32_1 = arith.constant 0 : i32
    %c0_i32_2 = arith.constant 0 : i32
    return %c0_i32, %c0_i32_0, %c0_i32_1 : i32, i32, i32
  }
  func.func @transform_5(%arg0: i32, %arg1: i32) -> (i32, i32, i32, i32) {
    %c0_i32 = arith.constant 0 : i32
    %c0_i32_0 = arith.constant 0 : i32
    %c0_i32_1 = arith.constant 0 : i32
    return %arg0, %c0_i32, %arg1, %c0_i32_0 : i32, i32, i32, i32
  }
  func.func @transform_6(%arg0: i32, %arg1: i32) -> (i32, i32, i32, i32) {
    %c0_i32 = arith.constant 0 : i32
    %c0_i32_0 = arith.constant 0 : i32
    %c0_i32_1 = arith.constant 0 : i32
    return %arg0, %c0_i32, %arg1, %c0_i32_0 : i32, i32, i32, i32
  }
  func.func @transform_7(%arg0: i32, %arg1: i32) -> (i32, i32, i32, i32) {
    %c0_i32 = arith.constant 0 : i32
    %c0_i32_0 = arith.constant 0 : i32
    %c0_i32_1 = arith.constant 0 : i32
    return %arg0, %c0_i32, %arg1, %c0_i32_0 : i32, i32, i32, i32
  }
}

</mosaic_0001>

<bundles_post_ra>
// kernel: tpu_custom_call.1
= control target key start
LH: loop header
LB: loop body
LE: loop exit
PB: predicated region body
PF: predicated region fallthrough
CT: control target
= control target key end

     0   :  { %s3840_s0 = inlined_call_operand.hbm [shape: f32[2,8,32], index: 0, kind: input, shape index: {}]   ;;  %s3841_s1 = inlined_call_operand.hbm [shape: f32[2,8,32], index: 1, kind: input, shape index: {}]   ;;  %s3842_s2 = inlined_call_operand.hbm [shape: f32[2,8,32], index: 2, kind: input, shape index: {}]   ;;  %s3843_s3 = inlined_call_operand.hbm [shape: f32[3,32,32], index: 3, kind: input, shape index: {}]   ;;  %s3844_s4 = inlined_call_operand.vmem [shape: f32[3,1,32], index: 4, kind: input, shape index: {}]   ;;  %s3845_s5 = inlined_call_operand.hbm [shape: f32[2,4,8,8], index: 5, kind: output, shape index: {0}]   ;;  %s3846_s6 = inlined_call_operand.hbm [shape: f32[2,4,8,8], index: 6, kind: output, shape index: {1}]   ;;  %s3847_s7 = inlined_call_operand.hbm [shape: f32[2,4,8,8], index: 7, kind: output, shape index: {2}]  }
   0x1   :  { %3870 = sst [smem:[#allocation26_spill]] %s3841_s1 }
   0x2   :  { %3871 = sst [smem:[#allocation27_spill]] %s3845_s5 }
   0x3   :  { %3872 = sst [smem:[#allocation28_spill]] %s3846_s6 }
   0x4   :  { %3873 = sst [smem:[#allocation29_spill]] %s3847_s7 }
   0x5   :  { %13 = vsyncpa [#allocation3], 0 }
   0x6   :  { %15 = vsyncpa [#allocation3 + $0x1], 0 }
   0x7   :  { %16 = vsyncpa [#allocation6], 0 }
   0x8   :  { %18 = vsyncpa [#allocation6 + $0x1], 0 }
   0x9   :  { %19 = vsyncpa [#allocation9], 0 }
   0xa   :  { %20 = vsyncpa [#allocation4], 0 }
   0xb   :  { %22 = vsyncpa [#allocation4 + $0x1], 0 }
   0xc   :  { %23 = vsyncpa [#allocation12], 0 }
   0xd   :  { %25 = vsyncpa [#allocation12 + $0x1], 0  ;;  %s3150_s24 = smov 0   ;;  %s3152_s25 = smov 0  }
   0xe   :  { %s3154_s26 = smov 0   ;;  %s3156_s27 = smov 0  }
   0xf   :  { %s3158_s28 = smov 0   ;;  %s3160_s29 = smov 0  }
  0x10 LB: > { %3874 = sst [smem:[#allocation19_spill]] %s3071_s24  ;;  %s43_s30 = sadd.s32 1, %s3087_s28  ;;  %s3091_s29 = sphi %s3160_s29, %s31_s29   ;;  %s3087_s28 = sphi %s3158_s28, %s3911_s28   ;;  %s3083_s27 = sphi %s3156_s27, %s3910_s27   ;;  %s3079_s26 = sphi %s3154_s26, %s3914_s26   ;;  %s3075_s25 = sphi %s3152_s25, %s3913_s25   ;;  %s3071_s24 = sphi %s3150_s24, %s3912_s24  }
  0x11   : > { %3875 = sst [smem:[#allocation20_spill]] %s3087_s28  ;;  %s52_s8 = sadd.s32 1, %s3079_s26 }
  0x12   : > { %3876 = sst [smem:[#allocation21_spill]] %s3091_s29  ;;  %p45_p0 = scmp.ge.s32.totalorder %s43_s30, 2 }
  0x13   : > { %p3848_p1 = scmp.ne.s32.totalorder %s3079_s26, %s3075_s25  ;;  %p60_p2 = scmp.eq.s32.totalorder %s3091_s29, 0 }
  0x14   : > { %s3916_s30 = smov (%p45_p0, %s43_s30), 0  ;;  %p2761_p5 = scmp.lt.s32.totalorder %s3091_s29, 2 }
  0x15   : > { %3877 = sst [smem:[#allocation22_spill]] %s3916_s30  ;;  %p61_p4 = por %p60_p2, %p3848_p1 }
  0x16   : > { %s47_s9 = ssub.s32 %s3087_s28, %s3916_s30  ;;  %s3850_s10 = sand.u32 1, %s3079_s26  }
  0x17   : > { %p50_p6 = scmp.eq.s32.totalorder %s47_s9, 0  ;;  %s3197_s11 = sshll.u32 %s3850_s10, 3 }
  0x18   : > { %s3200_s12 = sshll.u32 %s3087_s28, 7  ;;  %p3202_p7 = pnand %p2761_p5, %p61_p4 }
  0x19   : > { %s3207_s14 = scalar_select %p50_p6, %s3079_s26, %s52_s8  }
  0x1a   : > { %s3878_s13 = scalar_select %p3202_p7, 1, 0 }
  0x1b   : > { %3879 = sst [smem:[#allocation23_spill]] %s3207_s14  ;;  %s306_s15 = sand.u32 1, %s3091_s29  }
  0x1c   : > { %s3880_s1 = sld [smem:[#allocation26_spill]]  ;;  %s310_s19 = scalar_lea.vmem [#allocation5], %s3197_s11 }
  0x1d   : > { %s318_s20 = sshll.u32 %s310_s19, 4  ;;  %s3219_s21 = scalar_lea.sflag [#allocation6], %s306_s15  ;;  %s3217_s20 = int_to_ptr.vmem [resolvable:$true] %s318_s20 }
  0x1e   : > { %p3225_p9 = pneg %p3202_p7 }
  0x20   : > { %s3881_s23 = scalar_select %p3225_p9, 1, 0 }
  0x22   : > { %s3214_s18 = scalar_lea.hbm %s3880_s1, %s3200_s12  ;;  %s2828_s16 = scalar_lea.hbm %s3880_s1, 256 }
  0x23   : > { %s2823_s22 = scalar_lea.hbm %s3214_s18, 128  ;;  %p2829_p12 = scmp.lt.u32.totalorder %s3214_s18, %s3880_s1 }
  0x24   : > { %p2824_p8 = scmp.ne.s32.totalorder %s3214_s18, %s2823_s22  ;;  %p2830_p13 = scmp.lt.u32.totalorder %s2828_s16, %s2823_s22 }
  0x25   : > { %p2832_p2 = scmp.lt.u32.totalorder %s2823_s22, %s3214_s18 }
  0x26   : > { %p2826_p10 = pnand %p3225_p9, %p2824_p8  ;;  %p2831_p0 = por %p2830_p13, %p2829_p12 }
  0x28   : > { %p2827_p11 = pneg %p2826_p10  ;;  %p2833_p4 = por %p2832_p2, %p2831_p0 }
  0x2a   : > { %p2834_p5 = pnand %p2833_p4, %p2827_p11 }
  0x2c   : > { %2837 = shalt.err (!%p2834_p5)
}
  0x2d   : > { %s2838_s15 = scalar_lea.vmem %s3217_s20, 128  ;;  %s3093_s8 = smov [#allocation5]  }
  0x2e   : > { %p2839_p6 = scmp.ne.s32.totalorder %s3217_s20, %s2838_s15  ;;  %s2843_s9 = sshll.u32 %s3093_s8, 4  ;;  %s2844_s9 = int_to_ptr.vmem [resolvable:$false] %s2843_s9 }
  0x2f   : > { %s2845_s17 = scalar_lea.vmem %s2844_s9, 256  ;;  %p2846_p3 = scmp.lt.s32.totalorder %s3217_s20, %s2844_s9 }
  0x30   : > { %p2841_p8 = pnand %p2839_p6, %p3225_p9  ;;  %p2847_p1 = scmp.lt.s32.totalorder %s2845_s17, %s2838_s15 }
  0x32   : > { %p2842_p10 = pneg %p2841_p8  ;;  %p2848_p12 = por %p2847_p1, %p2846_p3 }
  0x34   : > { %p2849_p13 = pnand %p2848_p12, %p2842_p10 }
  0x36   : > { %2852 = shalt.err (!%p2849_p13)
}
  0x37   : > { %2746 = dma.hbm_to_vmem [thread:$0]  (!%p3202_p7), %s3214_s18, 128, %s3217_s20, %s3219_s21  }
  0x38   : > { %s3250_s22 = sadd.s32 4294967295, %s3091_s29   ;;  %s3849_s16 = sadd.s32 4294967294, %s3091_s29  }
  0x39   : > { %p65_p1 = scmp.ne.s32.totalorder %s3075_s25, %s3071_s24  ;;  %p3857_p3 = scmp.eq.s32.totalorder %s3250_s22, 0 }
  0x3a   : > { %p189_p11 = scmp.eq.s32.totalorder %s3250_s22, 1  ;;  %p195_p0 = scmp.eq.s32.totalorder %s3849_s16, 1 }
  0x3b   : > { %p2247_p2 = scmp.ge.s32.totalorder %s3091_s29, 1  ;;  %p3262_p4 = por %p3857_p3, %p65_p1 }
  0x3c   : > { %p3883_p5 = scmp.ne.s32.totalorder %s3079_s26, %s3075_s25  ;;  %p3273_p8 = por %p195_p0, %p65_p1 }
  0x3d   : > { %s3882_s19 = scalar_select %p3262_p4, 1, 0 }
  0x3e   : > { %p3269_p6 = por %p189_p11, %p3883_p5  ;;  %p258_p10 = scmp.lt.s32.totalorder %s3091_s29, 3 }
  0x3f   : > { %s3886_s20 = scalar_select %p3273_p8, 1, 0 }
  0x40   : > { %s3884_s18 = scalar_select %p3269_p6, 1, 0 }
  0x41   : > { %3887 = sst [smem:[#allocation25_spill]] %s3886_s20  ;;  %p3278_p12 = pnand %p2247_p2, %p258_p10 }
  0x42   : > { %3885 = sst [smem:[#allocation24_spill]] %s3884_s18  ;;  %s3094_s8 = smov [#allocation8]  }
  0x43   : > { %s3888_s15 = scalar_select %p3278_p12, 1, 0 }
  0x44   : > { %s270_s9 = sshll.u32 %s3094_s8, 4  ;;  %p2736_p13 = pneg %p3278_p12  ;;  %s3282_s9 = int_to_ptr.vmem [resolvable:$true] %s270_s9 }
  0x45   : > { %s3296_s1 = scalar_lea.hbm %s3840_s0, %s3200_s12  ;;  %s291_s30 = scalar_lea.vmem [#allocation2], %s3197_s11 }
  0x46   : > { %p3288_p11 = pnand %p2736_p13, %p3857_p3  ;;  %s299_s28 = sshll.u32 %s291_s30, 4  ;;  %s3299_s28 = int_to_ptr.vmem [resolvable:$true] %s299_s28 }
  0x47   : > { %s2853_s29 = scalar_lea.hbm %s3843_s3, 1536 }
  0x48   : > { %p2854_p1 = scmp.ne.s32.totalorder %s3843_s3, %s2853_s29  ;;  %p2855_p0 = pneg %p3288_p11 }
  0x49   : > { %p2860_p10 = scmp.lt.u32.totalorder %s2853_s29, %s3843_s3 }
  0x4a   : > { %p2856_p2 = pnand %p2855_p0, %p2854_p1 }
  0x4c   : > { %p2857_p5 = pneg %p2856_p2 }
  0x4e   : > { %p2862_p13 = pnand %p2860_p10, %p2857_p5 }
  0x50   : > { %2865 = shalt.err (!%p2862_p13)
}
  0x51   : > { %s2866_s30 = scalar_lea.vmem %s3282_s9, 1536  ;;  %p2874_p4 = scmp.lt.s32.totalorder %s3282_s9, %s3282_s9 }
  0x52   : > { %p2867_p3 = scmp.ne.s32.totalorder %s3282_s9, %s2866_s30  ;;  %p2875_p12 = scmp.lt.s32.totalorder %s2866_s30, %s2866_s30 }
  0x54   : > { %p2869_p8 = pnand %p2867_p3, %p2855_p0  ;;  %p2876_p7 = por %p2875_p12, %p2874_p4 }
  0x56   : > { %p2870_p6 = pneg %p2869_p8 }
  0x58   : > { %p2877_p9 = pnand %p2876_p7, %p2870_p6 }
  0x5a   : > { %2880 = shalt.err (!%p2877_p9)
}
  0x5b   : > { %s3095_s24 = smov 128   ;;  %s3096_s29 = smov 8  }
  0x5c   : > { %2739 = dma.hbm_to_vmem [thread:$0]  (!%p3288_p11), %s3843_s3, 1536, %s3282_s9, [#allocation9], %s3095_s24, %s3095_s24, %s3096_s29  }
  0x5d   : > { %s3890_s8 = sand.u32 1, %s3079_s26   ;;  %s2881_s16 = scalar_lea.hbm %s3296_s1, 128 }
  0x5e   : > { %s288_s10 = scalar_lea.sflag [#allocation3], %s3890_s8  ;;  %p2882_p7 = scmp.ne.s32.totalorder %s3296_s1, %s2881_s16 }
  0x5f   : > { %p3891_p9 = scmp.ne.s32.totalorder %s3881_s23, 0  ;;  %s2886_s5 = scalar_lea.hbm %s3840_s0, 256 }
  0x60   : > { %p2887_p6 = scmp.lt.u32.totalorder %s3296_s1, %s3840_s0  ;;  %p2888_p8 = scmp.lt.u32.totalorder %s2886_s5, %s2881_s16 }
  0x61   : > { %p2884_p3 = pnand %p2882_p7, %p3891_p9  ;;  %p2890_p1 = scmp.lt.u32.totalorder %s2881_s16, %s3296_s1 }
  0x62   : > { %p2889_p12 = por %p2888_p8, %p2887_p6 }
  0x63   : > { %p2885_p4 = pneg %p2884_p3 }
  0x64   : > { %p2891_p0 = por %p2890_p1, %p2889_p12 }
  0x66   : > { %p2892_p11 = pnand %p2891_p0, %p2885_p4 }
  0x68   : > { %2895 = shalt.err (!%p2892_p11)
}
  0x69   : > { %s2896_s9 = scalar_lea.vmem %s3299_s28, 128  ;;  %s3097_s7 = smov [#allocation2]  }
  0x6a   : > { %p2897_p2 = scmp.ne.s32.totalorder %s3299_s28, %s2896_s9  ;;  %s2901_s17 = sshll.u32 %s3097_s7, 4  ;;  %s2902_s17 = int_to_ptr.vmem [resolvable:$false] %s2901_s17 }
  0x6b   : > { %s2903_s6 = scalar_lea.vmem %s2902_s17, 256  ;;  %p2904_p13 = scmp.lt.s32.totalorder %s3299_s28, %s2902_s17 }
  0x6c   : > { %p2899_p5 = pnand %p2897_p2, %p3891_p9  ;;  %p2905_p7 = scmp.lt.s32.totalorder %s2903_s6, %s2896_s9 }
  0x6e   : > { %p2900_p10 = pneg %p2899_p5  ;;  %p2906_p3 = por %p2905_p7, %p2904_p13 }
  0x70   : > { %p2907_p6 = pnand %p2906_p3, %p2900_p10 }
  0x72   : > { %2910 = shalt.err (!%p2907_p6)
}
  0x73   : > { %p3892_p4 = scmp.ne.s32.totalorder %s3878_s13, 0  ;;  %s3349_s24 = scalar_lea.hbm %s3842_s2, %s3200_s12 }
  0x74   : > { %s329_s29 = scalar_lea.vmem [#allocation7], %s3197_s11  ;;  %s2911_s20 = scalar_lea.hbm %s3349_s24, 128 }
  0x75   : > { %2743 = dma.hbm_to_vmem [thread:$0]  (!%p3892_p4), %s3296_s1, 128, %s3299_s28, %s288_s10  }
  0x76   : > { %s337_s14 = sshll.u32 %s329_s29, 4  ;;  %p2912_p8 = scmp.ne.s32.totalorder %s3349_s24, %s2911_s20  ;;  %s338_s14 = int_to_ptr.vmem [resolvable:$true] %s337_s14 }
  0x77   : > { %s2916_s1 = scalar_lea.hbm %s3842_s2, 256  ;;  %p2917_p0 = scmp.lt.u32.totalorder %s3349_s24, %s3842_s2 }
  0x78   : > { %p2914_p12 = pnand %p2912_p8, %p3891_p9  ;;  %p2918_p11 = scmp.lt.u32.totalorder %s2916_s1, %s2911_s20 }
  0x79   : > { %p2920_p5 = scmp.lt.u32.totalorder %s2911_s20, %s3349_s24 }
  0x7a   : > { %p2915_p1 = pneg %p2914_p12  ;;  %p2919_p2 = por %p2918_p11, %p2917_p0 }
  0x7c   : > { %p2921_p10 = por %p2920_p5, %p2919_p2 }
  0x7e   : > { %p2922_p13 = pnand %p2921_p10, %p2915_p1 }
  0x80   : > { %2925 = shalt.err (!%p2922_p13)
}
  0x81   : > { %s2926_s11 = scalar_lea.vmem %s338_s14, 128  ;;  %s3098_s12 = smov [#allocation7]  }
  0x82   : > { %p2927_p7 = scmp.ne.s32.totalorder %s338_s14, %s2926_s11  ;;  %s2931_s30 = sshll.u32 %s3098_s12, 4  ;;  %s2932_s30 = int_to_ptr.vmem [resolvable:$false] %s2931_s30 }
  0x83   : > { %s2933_s9 = scalar_lea.vmem %s2932_s30, 256  ;;  %p2934_p8 = scmp.lt.s32.totalorder %s338_s14, %s2932_s30 }
  0x84   : > { %p2929_p3 = pnand %p2927_p7, %p3891_p9  ;;  %p2935_p12 = scmp.lt.s32.totalorder %s2933_s9, %s2926_s11 }
  0x86   : > { %p2930_p6 = pneg %p2929_p3  ;;  %p2936_p4 = por %p2935_p12, %p2934_p8 }
  0x88   : > { %p2937_p0 = pnand %p2936_p4, %p2930_p6 }
  0x8a   : > { %2940 = shalt.err (!%p2937_p0)
}
  0x8b   : > { %p3893_p11 = scmp.ne.s32.totalorder %s3878_s13, 0  ;;  %p3894_p1 = scmp.ne.s32.totalorder %s3888_s15, 0 }
  0x8c   : > { %s3373_s23 = sand.u32 (!%p3894_p1), 1, %s3075_s25   ;;  %p3895_p9 = scmp.ne.s32.totalorder (!%p3894_p1), %s3882_s19, 0 }
  0x8d   : > { %2749 = dma.hbm_to_vmem [thread:$0]  (!%p3893_p11), %s3349_s24, 128, %s338_s14, %s3219_s21  }
  0x8e   : > { %346 = sbr.rel (%p3894_p1) target bundleno = 629 (0x275), region = 40  ;;  %s3376_s7 = sshll.u32 (!%p3894_p1), %s3373_s23, 3 }
  0x8f   : > { %s349_s17 = scalar_lea.sflag (!%p3894_p1), [#allocation3], %s3373_s23  ;;  %s352_s6 = scalar_lea.vmem (!%p3894_p1), [#allocation2], %s3376_s7 }
  0x95   : > { %3050 = dma.done.wait (%p3895_p9), %s349_s17, 128  }
  0x96   : > { %3052 = vsyncadd (%p3895_p9), %s349_s17, 4294967168  ;;  %s357_s13 = sand.u32 1, %s3250_s22   ;;  %s361_s15 = scalar_lea.vmem [#allocation5], %s3376_s7 }
  0x97   : > { %s358_s21 = scalar_lea.sflag [#allocation6], %s357_s13 }
  0x98   : > { %3054 = dma.done.wait (%p3895_p9), %s358_s21, 256  }
  0x99   : > { %3056 = vsyncadd (%p3895_p9), %s358_s21, 4294967040  ;;  %s370_s5 = scalar_lea.vmem [#allocation7], %s3376_s7  ;;  %p3896_p4 = scmp.eq.s32.totalorder %s3250_s22, 0 }
  0x9b   : > { %3058 = dma.done.wait (%p3896_p4), [#allocation9], 1536   ;;  %p3897_p2 = pmov %p3896_p4 }
  0x9c   : > { %v3099_v0 = vmov 0.0|0.0   ;;  %vm3100_vm0 = vmmov 0   ;;  %v3101_v1 = vmov 0.0   ;;  %vm437_vm1 = vcmask 261120   ;;  %v426_v2 = vld [vmem:[#allocation8] sm:$0xff]  ;;  %v427_v3 = vld [vmem:[#allocation8 + $0x8] sm:$0xff] }
  0x9d   : > { %3060 = vsyncadd (%p3897_p2), [#allocation9], 4294965760  ;;  %2580 = vmatprep.subr.bf16.mxu1 %v3099_v0  ;;  %2598 = vmatprep.subr.bf16.mxu0 %v3099_v0  ;;  %v428_v4 = vld [vmem:[#allocation8 + $0x10] sm:$0xff]  ;;  %v442_v5 = vand.u32 4294901760, %v426_v2  ;;  %v445_v6 = vand.u32 4294901760, %v427_v3  ;;  %v429_v7 = vld [vmem:[#allocation8 + $0x18] sm:$0xff] }
  0x9e   : > { %2390 = vmatprep.mubr.msk.f32.mxu1 %vm3100_vm0, %v3101_v1  ;;  %2423 = vmatprep.mubr.msk.f32.mxu0 %vm3100_vm0, %v3101_v1  ;;  %v448_v8 = vand.u32 4294901760, %v428_v4  ;;  %v425_v9 = vld [vmem:[%s352_s6] sm:$0xff]  ;;  %v451_v10 = vand.u32 4294901760, %v429_v7  ;;  %v3439_v33 = vld [vmem:[#allocation8 + $0x40] sm:$0xff]  ;;  %v3441_v34 = vld [vmem:[#allocation8 + $0x48] sm:$0xff]  ;;  %s2261_s24 = sshll.u32 %s3373_s23, 5 }
  0x9f   : > { %v439_v11 = vsel %vm437_vm1, %v425_v9, 0  ;;  %v3404_v12 = vpack.c.bf16 %v445_v6, %v442_v5  ;;  %v3406_v13 = vsub.f32 %v426_v2, %v442_v5  ;;  %v3408_v14 = vsub.f32 %v427_v3, %v445_v6  ;;  %v1428_v38 = vld [vmem:[%s370_s5] sm:$0xff]  ;;  %v3445_v40 = vld [vmem:[#allocation8 + $0x20] sm:$0xff]  ;;  %v3447_v41 = vld [vmem:[#allocation8 + $0x28] sm:$0xff]  ;;  %s3675_s29 = scalar_lea.vmem [#allocation10], %s2261_s24  ;;  %s3102_s14 = smov 120  }
  0xa0   : > { %v3410_v15 = vsub.f32 %v428_v4, %v448_v8  ;;  %v3412_v16 = vsub.f32 %v429_v7, %v451_v10  ;;  %v3414_v17 = vand.u32 4294901760, %v439_v11  ;;  %v3418_v18 = vpack.c.bf16 %v451_v10, %v448_v8  ;;  %v926_v42 = vld [vmem:[%s361_s15] sm:$0xff]  ;;  %v3456_v46 = vld [vmem:[#allocation8 + $0x50] sm:$0xff]  ;;  %v3458_v47 = vld [vmem:[#allocation8 + $0x58] sm:$0xff]  ;;  %s3103_s20 = smov 112   ;;  %s3685_s10 = scalar_lea.vmem [#allocation13], %s2261_s24 }
  0xa1   : > { %2582 = vmatpush3.bf16.msra.mxu1 %v3404_v12  ;;  %2600 = vmatpush3.bf16.msra.mxu0 %v3404_v12  ;;  %v523_v19 = vand.u32 4294901760, %v3406_v13  ;;  %v530_v20 = vand.u32 4294901760, %v3408_v14  ;;  %v1446_v44 = vand.u32 4294901760, %v3439_v33  ;;  %v1449_v45 = vand.u32 4294901760, %v3441_v34  ;;  %v3467_v53 = vld [vmem:[#allocation8 + $0x30] sm:$0xff]  ;;  %v3469_v54 = vld [vmem:[#allocation8 + $0x38] sm:$0xff] }
  0xa2   : > { %v537_v21 = vand.u32 4294901760, %v3410_v15  ;;  %2583 = vmatprep.subr.bf16.mxu1 %v3099_v0  ;;  %2601 = vmatprep.subr.bf16.mxu0 %v3099_v0  ;;  %v3426_v22 = vsub.f32 %v439_v11, %v3414_v17  ;;  %v544_v23 = vand.u32 4294901760, %v3412_v16  ;;  %v1443_v48 = vsel %vm437_vm1, %v1428_v38, 0  ;;  %s417_s11 = scalar_lea.vmem [#allocation11], %s2261_s24  ;;  %s3104_s12 = smov 104  }
  0xa3   : > { %v524_v24 = vsub.f32 %v3406_v13, %v523_v19  ;;  %v531_v25 = vsub.f32 %v3408_v14, %v530_v20  ;;  %v2605_v31 = vpack.c.bf16 %v530_v20, %v523_v19  ;;  %v944_v50 = vand.u32 4294901760, %v3445_v40  ;;  %s2007_s30 = sshll.u32 %s3675_s29, 4  ;;  %s2024_s9 = sshll.u32 %s417_s11, 4  ;;  %s3698_s30 = int_to_ptr.vmem [resolvable:$true] %s2007_s30  ;;  %s3700_s9 = int_to_ptr.vmem [resolvable:$true] %s2024_s9 }
  0xa4   : > { %v538_v26 = vsub.f32 %v3410_v15, %v537_v21  ;;  %v512_v27 = vand.u32 4294901760, %v3426_v22  ;;  %v545_v28 = vsub.f32 %v3412_v16, %v544_v23  ;;  %v2608_v43 = vpack.c.bf16 %v544_v23, %v537_v21  ;;  %s3898_s7 = sld [smem:[#allocation24_spill]]  ;;  %s3696_s17 = sshll.u32 %s3083_s27, 9 }
  0xa5   : > { %2585 = vmatpush3.bf16.msra.mxu1 %v3418_v18  ;;  %2603 = vmatpush3.bf16.msra.mxu0 %v3418_v18  ;;  %v525_v29 = vand.u32 4294901760, %v524_v24  ;;  %v532_v30 = vand.u32 4294901760, %v531_v25  ;;  %v947_v51 = vand.u32 4294901760, %v3447_v41  ;;  %v941_v52 = vsel %vm437_vm1, %v926_v42, 0  ;;  %s3899_s15 = sld [smem:[#allocation28_spill]]  ;;  %s3900_s18 = sld [smem:[#allocation27_spill]] }
  0xa6   : > { %v513_v32 = vsub.f32 %v3426_v22, %v512_v27  ;;  %2586 = vmatprep.subr.bf16.mxu1 %v3099_v0  ;;  %2604 = vmatprep.subr.bf16.mxu0 %v3099_v0  ;;  %v539_v36 = vand.u32 4294901760, %v538_v26  ;;  %v546_v37 = vand.u32 4294901760, %v545_v28  ;;  %v3471_v55 = vand.u32 4294901760, %v1443_v48  ;;  %s3105_s8 = smov [#allocation11]  }
  0xa7   : > { %v2587_v35 = vpack.c.bf16 %v532_v30, %v525_v29  ;;  %v3474_v56 = vsub.f32 %v3439_v33, %v1446_v44  ;;  %v3477_v57 = vsub.f32 %v3441_v34, %v1449_v45  ;;  %v1452_v58 = vand.u32 4294901760, %v3456_v46  ;;  %s2945_s16 = sshll.u32 %s3105_s8, 4  ;;  %s2946_s16 = int_to_ptr.vmem [resolvable:$false] %s2945_s16 }
  0xa8   : > { %v514_v39 = vand.u32 4294901760, %v513_v32  ;;  %2424 = vmatmul.mubr.f32.vlgmr.msra.gmra.mrb[0].mxu0 %v512_v27  ;;  %v2590_v49 = vpack.c.bf16 %v546_v37, %v539_v36  ;;  %v1455_v59 = vand.u32 4294901760, %v3458_v47  ;;  %v2593_v60 = vpack.c.bf16 %v3408_v14, %v3406_v13  ;;  %s2947_s1 = scalar_lea.vmem %s2946_s16, 1024  ;;  %p2948_p3 = scmp.lt.s32.totalorder %s3700_s9, %s2946_s16 }
  0xa9   : > { %2606 = vmatpush3.bf16.msra.mxu0 %v2605_v31  ;;  %2434 = vmatprep.mubr.msk.f32.mxu0 %vm3100_vm0, %v3101_v1  ;;  %v3484_v61 = vand.u32 4294901760, %v941_v52  ;;  %v3487_v62 = vsub.f32 %v3445_v40, %v944_v50  ;;  %v3490_v63 = vsub.f32 %v3447_v41, %v947_v51  ;;  %v950_v2 = vand.u32 4294901760, %v3467_v53 }
  0xaa   : > { %2391 = vmatmul.mubr.f32.vlgmr.msra.gmra.mrb[0].mxu1 %v514_v39  ;;  %2607 = vmatprep.subr.bf16.mxu0 %v3099_v0  ;;  %v953_v3 = vand.u32 4294901760, %v3469_v54  ;;  %v3497_v4 = vsub.f32 %v1443_v48, %v3471_v55  ;;  %v3503_v5 = vsub.f32 %v3456_v46, %v1452_v58  ;;  %v3506_v6 = vsub.f32 %v3458_v47, %v1455_v59  ;;  %p3901_p10 = scmp.ne.s32.totalorder %s3898_s7, 0 }
  0xab   : > { %2588 = vmatpush3.bf16.msra.mxu1 %v2587_v35  ;;  %2401 = vmatprep.mubr.msk.f32.mxu1 %vm3100_vm0, %v3101_v1  ;;  %v1527_v7 = vand.u32 4294901760, %v3474_v56  ;;  %v1534_v8 = vand.u32 4294901760, %v3477_v57  ;;  %v2596_v9 = vpack.c.bf16 %v3412_v16, %v3410_v15  ;;  %v3515_v10 = vsub.f32 %v941_v52, %v3484_v61  ;;  %s3708_s5 = scalar_lea.hbm %s3899_s15, %s3696_s17  ;;  %s3714_s24 = scalar_lea.hbm %s3900_s18, %s3696_s17 }
  0xac   : > { %2589 = vmatprep.subr.bf16.mxu1 %v3099_v0  ;;  %v3520_v11 = vsub.f32 %v3467_v53, %v950_v2  ;;  %v1025_v13 = vand.u32 4294901760, %v3487_v62  ;;  %v1032_v14 = vand.u32 4294901760, %v3490_v63  ;;  %v3528_v15 = vpack.c.bf16 %v1449_v45, %v1446_v44 }
  0xad   : > { %2609 = vmatpush3.bf16.msra.mxu0 %v2608_v43  ;;  %v1516_v16 = vand.u32 4294901760, %v3497_v4  ;;  %v1528_v19 = vsub.f32 %v3474_v56, %v1527_v7  ;;  %v1535_v20 = vsub.f32 %v3477_v57, %v1534_v8  ;;  %v1541_v21 = vand.u32 4294901760, %v3503_v5 }
  0xae   : > { %2610 = vmatprep.subr.bf16.mxu0 %v3099_v0  ;;  %v1548_v23 = vand.u32 4294901760, %v3506_v6  ;;  %v3541_v24 = vpack.c.bf16 %v947_v51, %v944_v50  ;;  %v1014_v25 = vand.u32 4294901760, %v3515_v10  ;;  %v1033_v26 = vsub.f32 %v3490_v63, %v1032_v14 }
  0xaf   : > { %2591 = vmatpush3.bf16.msra.mxu1 %v2590_v49  ;;  %v1039_v27 = vand.u32 4294901760, %v3520_v11  ;;  %v3554_v29 = vpack.c.bf16 %v1455_v59, %v1452_v58  ;;  %v1517_v30 = vsub.f32 %v3497_v4, %v1516_v16  ;;  %v1529_v31 = vand.u32 4294901760, %v1528_v19  ;;  %v2264_v58 = vld [vmem:[%s3844_s4] ss:$0 sm:$0xff] }
  0xb0   : > { %2592 = vmatprep.subr.bf16.mxu1 %v3099_v0  ;;  %2435 = vmatmul.mubr.f32.vlgmr.msra.gmra.mrb[0].mxu0 %v3414_v17  ;;  %v1536_v32 = vand.u32 4294901760, %v1535_v20  ;;  %v1542_v33 = vsub.f32 %v3503_v5, %v1541_v21  ;;  %v3570_v34 = vpack.c.bf16 %v953_v3, %v950_v2  ;;  %v1015_v35 = vsub.f32 %v3515_v10, %v1014_v25 }
  0xb1   : > { %2612 = vmatpush3.bf16.msra.mxu0 %v3404_v12  ;;  %2445 = vmatprep.mubr.msk.f32.mxu0 %vm3100_vm0, %v3101_v1  ;;  %v3523_v12 = vsub.f32 %v3469_v54, %v953_v3  ;;  %v1034_v37 = vand.u32 4294901760, %v1033_v26  ;;  %v1040_v38 = vsub.f32 %v3520_v11, %v1039_v27  ;;  %v1518_v39 = vand.u32 4294901760, %v1517_v30 }
  0xb2   : > { %2402 = vmatmul.mubr.f32.vlgmr.msra.gmra.mrb[0].mxu1 %v3414_v17  ;;  %2613 = vmatprep.subr.bf16.mxu0 %v3099_v0  ;;  %v2659_v40 = vpack.c.bf16 %v1536_v32, %v1529_v31  ;;  %v1543_v41 = vand.u32 4294901760, %v1542_v33  ;;  %v1016_v43 = vand.u32 4294901760, %v1015_v35  ;;  %v2665_v49 = vpack.c.bf16 %v3477_v57, %v3474_v56 }
  0xb3   : > { %2594 = vmatpush3.bf16.msra.mxu1 %v2593_v60  ;;  %2412 = vmatprep.mubr.msk.f32.mxu1 %vm3100_vm0, %v3101_v1  ;;  %v1046_v28 = vand.u32 4294901760, %v3523_v12  ;;  %v1041_v45 = vand.u32 4294901760, %v1040_v38  ;;  %v2629_v50 = vpack.c.bf16 %v3490_v63, %v3487_v62  ;;  %v2668_v51 = vpack.c.bf16 %v3506_v6, %v3503_v5 }
  0xb4   : > { %2595 = vmatprep.subr.bf16.mxu1 %v3099_v0  ;;  %v2632_v52 = vpack.c.bf16 %v3523_v12, %v3520_v11  ;;  %v2677_v53 = vpack.c.bf16 %v1534_v8, %v1527_v7  ;;  %v2641_v54 = vpack.c.bf16 %v1032_v14, %v1025_v13  ;;  %v2680_v56 = vpack.c.bf16 %v1548_v23, %v1541_v21 }
  0xb5   : > { %2615 = vmatpush3.bf16.msra.mxu0 %v3418_v18  ;;  %v1026_v18 = vsub.f32 %v3487_v62, %v1025_v13  ;;  %v2644_v57 = vpack.c.bf16 %v1046_v28, %v1039_v27  ;;  %vm1930_vm2 = vcmask 64512  }
  0xb6   : > { %2652 = vmatprep.subr.bf16.mxu0 %v3099_v0 }
  0xb7   : > { %2597 = vmatpush3.bf16.msra.mxu1 %v2596_v9  ;;  %v1027_v36 = vand.u32 4294901760, %v1026_v18 }
  0xb8   : > { %2446 = vmatmul.mubr.f32.vlgmr.msra.gmra.mrb[0].mxu0 %v3414_v17  ;;  %2616 = vmatprep.subr.bf16.mxu1 %v3099_v0  ;;  %v1549_v17 = vsub.f32 %v3506_v6, %v1548_v23 }
  0xb9   : > { %2654 = vmatpush3.bf16.msra.mxu0 %v3528_v15  ;;  %2522 = vmatprep.mubr.msk.f32.mxu0 %vm3100_vm0, %v3101_v1  ;;  %v2623_v44 = vpack.c.bf16 %v1034_v37, %v1027_v36 }
  0xba   : > { %2413 = vmatmul.mubr.f32.vlgmr.msra.gmra.mrb[0].mxu1 %v3426_v22  ;;  %2655 = vmatprep.subr.bf16.mxu0 %v3099_v0  ;;  %v1047_v22 = vsub.f32 %v3523_v12, %v1046_v28  ;;  %v1550_v42 = vand.u32 4294901760, %v1549_v17 }
  0xbb   : > { %2618 = vmatpush3.bf16.msra.mxu1 %v3541_v24  ;;  %2456 = vmatprep.mubr.msk.f32.mxu1 %vm3100_vm0, %v3101_v1 }
  0xbc   : > { %2619 = vmatprep.subr.bf16.mxu1 %v3099_v0  ;;  %v1048_v46 = vand.u32 4294901760, %v1047_v22  ;;  %v2662_v47 = vpack.c.bf16 %v1550_v42, %v1543_v41 }
  0xbd   : > { %2657 = vmatpush3.bf16.msra.mxu0 %v3554_v29 }
  0xbe   : > { %2658 = vmatprep.subr.bf16.mxu0 %v3099_v0  ;;  %v2626_v48 = vpack.c.bf16 %v1048_v46, %v1041_v45 }
  0xbf   : > { %2621 = vmatpush3.bf16.msra.mxu1 %v3570_v34 }
  0xc0   : > { %2622 = vmatprep.subr.bf16.mxu1 %v3099_v0  ;;  %2523 = vmatmul.mubr.f32.vlgmr.msra.gmra.mrb[2].mxu0 %v1518_v39 }
  0xc1   : > { %2660 = vmatpush3.bf16.msra.mxu0 %v2659_v40  ;;  %2533 = vmatprep.mubr.msk.f32.mxu0 %vm3100_vm0, %v3101_v1 }
  0xc2   : > { %2457 = vmatmul.mubr.f32.vlgmr.msra.gmra.mrb[2].mxu1 %v1016_v43  ;;  %2661 = vmatprep.subr.bf16.mxu0 %v3099_v0 }
  0xc3   : > { %2624 = vmatpush3.bf16.msra.mxu1 %v2623_v44  ;;  %2467 = vmatprep.mubr.msk.f32.mxu1 %vm3100_vm0, %v3101_v1 }
  0xc4   : > { %2625 = vmatprep.subr.bf16.mxu1 %v3099_v0 }
  0xc5   : > { %2663 = vmatpush3.bf16.msra.mxu0 %v2662_v47 }
  0xc6   : > { %2664 = vmatprep.subr.bf16.mxu0 %v3099_v0 }
  0xc7   : > { %2627 = vmatpush3.bf16.msra.mxu1 %v2626_v48 }
  0xc8   : > { %2628 = vmatprep.subr.bf16.mxu1 %v3099_v0  ;;  %2534 = vmatmul.mubr.f32.vlgmr.msra.gmra.mrb[2].mxu0 %v3471_v55 }
  0xc9   : > { %2666 = vmatpush3.bf16.msra.mxu0 %v2665_v49  ;;  %2544 = vmatprep.mubr.msk.f32.mxu0 %vm3100_vm0, %v3101_v1 }
  0xca   : > { %2468 = vmatmul.mubr.f32.vlgmr.msra.gmra.mrb[2].mxu1 %v3484_v61  ;;  %2667 = vmatprep.subr.bf16.mxu0 %v3099_v0 }
  0xcb   : > { %2630 = vmatpush3.bf16.msra.mxu1 %v2629_v50  ;;  %2478 = vmatprep.mubr.msk.f32.mxu1 %vm3100_vm0, %v3101_v1 }
  0xcc   : > { %2631 = vmatprep.subr.bf16.mxu1 %v3099_v0 }
  0xcd   : > { %2669 = vmatpush3.bf16.msra.mxu0 %v2668_v51 }
  0xce   : > { %2670 = vmatprep.subr.bf16.mxu0 %v3099_v0 }
  0xcf   : > { %2633 = vmatpush3.bf16.msra.mxu1 %v2632_v52 }
  0xd0   : > { %2634 = vmatprep.subr.bf16.mxu1 %v3099_v0  ;;  %2545 = vmatmul.mubr.f32.vlgmr.msra.gmra.mrb[2].mxu0 %v3497_v4 }
  0xd1   : > { %2672 = vmatpush3.bf16.msra.mxu0 %v3528_v15  ;;  %2555 = vmatprep.mubr.msk.f32.mxu0 %vm3100_vm0, %v3101_v1 }
  0xd2   : > { %2479 = vmatmul.mubr.f32.vlgmr.msra.gmra.mrb[2].mxu1 %v3515_v10  ;;  %2673 = vmatprep.subr.bf16.mxu0 %v3099_v0 }
  0xd3   : > { %2636 = vmatpush3.bf16.msra.mxu1 %v3541_v24  ;;  %2489 = vmatprep.mubr.msk.f32.mxu1 %vm3100_vm0, %v3101_v1 }
  0xd4   : > { %2637 = vmatprep.subr.bf16.mxu1 %v3099_v0 }
  0xd5   : > { %2675 = vmatpush3.bf16.msra.mxu0 %v3554_v29 }
  0xd6   : > { %2676 = vmatprep.subr.bf16.mxu0 %v3099_v0 }
  0xd7   : > { %2639 = vmatpush3.bf16.msra.mxu1 %v3570_v34 }
  0xd8   : > { %2640 = vmatprep.subr.bf16.mxu1 %v3099_v0  ;;  %2556 = vmatmul.mubr.f32.vlgmr.msra.gmra.mrb[2].mxu0 %v1516_v16 }
  0xd9   : > { %2678 = vmatpush3.bf16.msra.mxu0 %v2677_v53  ;;  %2566 = vmatprep.mubr.msk.f32.mxu0 %vm3100_vm0, %v3101_v1 }
  0xda   : > { %2490 = vmatmul.mubr.f32.vlgmr.msra.gmra.mrb[2].mxu1 %v1014_v25  ;;  %2679 = vmatprep.subr.bf16.mxu0 %v3099_v0 }
  0xdb   : > { %2642 = vmatpush3.bf16.msra.mxu1 %v2641_v54  ;;  %2500 = vmatprep.mubr.msk.f32.mxu1 %vm3100_vm0, %v3101_v1 }
  0xdc   : > { %2643 = vmatprep.subr.bf16.mxu1 %v3099_v0 }
  0xdd   : > { %2681 = vmatpush3.bf16.msra.mxu0 %v2680_v56 }
  0xde   : > { %2682 = vmatprep.subr.bf16.mxu0 %v3099_v0 }
  0xdf   : > { %2645 = vmatpush3.bf16.msra.mxu1 %v2644_v57 }
  0xe0   : > { %2646 = vmatprep.subr.bf16.mxu1 %v3099_v0  ;;  %2567 = vmatmul.mubr.f32.vlgmr.msra.gmra.mrb[2].mxu0 %v3471_v55 }
  0xe1   : > { %2684 = vmatpush3.bf16.msra.mxu0 %v3528_v15  ;;  %2577 = vmatprep.mubr.msk.f32.mxu0 %vm3100_vm0, %v3101_v1 }
  0xe2   : > { %2501 = vmatmul.mubr.f32.vlgmr.msra.gmra.mrb[2].mxu1 %v3484_v61  ;;  %2685 = vmatprep.subr.bf16.mxu0 %v3099_v0 }
  0xe3   : > { %2648 = vmatpush3.bf16.msra.mxu1 %v3541_v24  ;;  %2511 = vmatprep.mubr.msk.f32.mxu1 %vm3100_vm0, %v3101_v1 }
  0xe4   : > { %2649 = vmatprep.subr.bf16.mxu1 %v3099_v0 }
  0xe5   : > { %2687 = vmatpush3.bf16.msra.mxu0 %v3554_v29 }
  0xe7   : > { %2651 = vmatpush3.bf16.msra.mxu1 %v3570_v34 }
  0xe8   : > { %2578 = vmatmul.mubr.f32.vlgmr.msra.gmra.mrb[2].mxu0 %v3471_v55  ;;  %v2268_v55 = vld [vmem:[%s3844_s4 + $0x2] ss:$0 sm:$0xff] }
  0xea   : > { %2512 = vmatmul.mubr.f32.vlgmr.msra.gmra.mrb[2].mxu1 %v3484_v61  ;;  %v2266_v61 = vld [vmem:[%s3844_s4 + $0x1] ss:$0 sm:$0xff] }
 0x18b   : > { %v922_v59 = vpop.f32.mrb[0].mxu0 }
 0x18c   : > { %v2447_v60 = vpop.f32.mrb[1].mxu0 }
 0x18d   : > { %v687_v62 = vpop.f32.mrb[0].mxu1 }
 0x18e   : > { %v2688_v63 = vadd.f32 %v2264_v58, %v687_v62  ;;  %v2414_v1 = vpop.f32.mrb[1].mxu1 }
 0x190   : > { %v2689_v0 = vadd.f32 %v2688_v63, %v922_v59 }
 0x192   : > { %1931 = vst.msk [vmem:[%s3675_s29] sm:$0xff] %vm1930_vm2, %v2689_v0  ;;  %1935 = vrot.lane.b32.xlu1 %v2689_v0, %s3102_s14 }
 0x196   : > { %1952 = vrot.lane.b32.xlu1 %v2689_v0, %s3103_s20 }
 0x1bb   : > { %v1926_v2 = vpop.f32.mrb[2].mxu0 }
 0x1bc   : > { %v2691_v3 = vadd.f32 %v2268_v55, %v1926_v2  ;;  %v2579_v4 = vpop.f32.mrb[3].mxu0 }
 0x1bd   : > { %v1424_v5 = vpop.f32.mrb[2].mxu1 }
 0x1be   : > { %v2690_v6 = vadd.f32 %v2266_v61, %v1424_v5  ;;  %1933 = vst.msk [vmem:[%s3685_s10] sm:$0xff] %vm1930_vm2, %v2691_v3  ;;  %v2513_v7 = vpop.f32.mrb[3].mxu1 }
 0x1c0   : > { %1932 = vst.msk [vmem:[%s417_s11] sm:$0xff] %vm1930_vm2, %v2690_v6  ;;  %1972 = vrot.lane.b32.xlu1 %v2690_v6, %s3104_s12  ;;  %1941 = vrot.lane.b32.xlu0 %v2690_v6, %s3102_s14 }
 0x1c4   : > { %1967 = vrot.lane.b32.xlu1 %v2689_v0, %s3104_s12  ;;  %1957 = vrot.lane.b32.xlu0 %v2690_v6, %s3103_s20 }
 0x1c8   : > { %1947 = vrot.lane.b32.xlu0 %v2691_v3, %s3102_s14  ;;  %s3721_s14 = scalar_lea.sflag [#allocation12], %s357_s13 }
 0x1cc   : > { %1962 = vrot.lane.b32.xlu0 %v2691_v3, %s3103_s20  ;;  %s2941_s20 = scalar_lea.vmem %s3700_s9, 512 }
 0x1cd   : > { %p2942_p5 = scmp.ne.s32.totalorder %s3700_s9, %s2941_s20  ;;  %p2949_p6 = scmp.lt.s32.totalorder %s2947_s1, %s2941_s20 }
 0x1cf   : > { %p2943_p13 = pnand %p2942_p5, %p3901_p10  ;;  %p2950_p8 = por %p2949_p6, %p2948_p3 }
 0x1d0   : > { %1977 = vrot.lane.b32.xlu0 %v2691_v3, %s3104_s12 }
 0x1d1   : > { %p2944_p7 = pneg %p2943_p13 }
 0x1d3   : > { %p2951_p12 = pnand %p2950_p8, %p2944_p7 }
 0x204   : > { %v1936_v8 = vpop.permute.xlu1 %1935 }
 0x205   : > { %2269 = vst.msk [vmem:[%s3675_s29 + $0x8] sm:$0xff] %vm1930_vm2, %v1936_v8 }
 0x208   : > { %v1953_v9 = vpop.permute.xlu1 %1952 }
 0x209   : > { %2272 = vst.msk [vmem:[%s3675_s29 + $0x10] sm:$0xff] %vm1930_vm2, %v1953_v9 }
 0x232   : > { %v1973_v10 = vpop.permute.xlu1 %1972  ;;  %v1942_v11 = vpop.permute.xlu0 %1941 }
 0x233   : > { %2276 = vst.msk [vmem:[%s417_s11 + $0x18] sm:$0xff] %vm1930_vm2, %v1973_v10  ;;  %2270 = vst.msk [vmem:[%s417_s11 + $0x8] sm:$0xff] %vm1930_vm2, %v1942_v11 }
 0x236   : > { %v1968_v12 = vpop.permute.xlu1 %1967  ;;  %v1958_v13 = vpop.permute.xlu0 %1957 }
 0x237   : > { %2275 = vst.msk [vmem:[%s3675_s29 + $0x18] sm:$0xff] %vm1930_vm2, %v1968_v12  ;;  %2273 = vst.msk [vmem:[%s417_s11 + $0x10] sm:$0xff] %vm1930_vm2, %v1958_v13 }
 0x238   : > { %2954 = shalt.err (!%p2951_p12)
}
 0x239   : > { %s2955_s22 = scalar_lea.hbm %s3708_s5, 512  ;;  %s2959_s28 = scalar_lea.hbm %s3899_s15, 1024 }
 0x23a   : > { %p2956_p0 = scmp.ne.s32.totalorder %s3708_s5, %s2955_s22  ;;  %p2960_p9 = scmp.lt.u32.totalorder %s3708_s5, %s3899_s15 }
 0x23b   : > { %p2961_p4 = scmp.lt.u32.totalorder %s2959_s28, %s2955_s22  ;;  %p2963_p5 = scmp.lt.u32.totalorder %s2955_s22, %s3708_s5 }
 0x23c   : > { %p2957_p11 = pnand %p2956_p0, %p3901_p10 }
 0x23d   : > { %p2962_p2 = por %p2961_p4, %p2960_p9 }
 0x23e   : > { %p2958_p1 = pneg %p2957_p11 }
 0x23f   : > { %p2964_p13 = por %p2963_p5, %p2962_p2 }
 0x241   : > { %p2965_p7 = pnand %p2964_p13, %p2958_p1 }
 0x243   : > { %2968 = shalt.err (!%p2965_p7)
}
 0x244   : > { %s3106_s6 = smov 128   ;;  %s3107_s21 = smov 8  }
 0x245   : > { %2731 = dma.vmem_to_hbm [thread:$0]  (%p3901_p10), %s3700_s9, 512, %s3708_s5, %s3721_s14, %s3106_s6, %s3106_s6, %s3107_s21  }
 0x246   : > { %s1983_s27 = scalar_lea.sflag [#allocation4], %s3373_s23  ;;  %s2969_s19 = scalar_lea.vmem %s3698_s30, 512 }
 0x247   : > { %p2970_p3 = scmp.ne.s32.totalorder %s3698_s30, %s2969_s19  ;;  %s3108_s20 = smov [#allocation10]  }
 0x248   : > { %s2973_s8 = sshll.u32 %s3108_s20, 4  ;;  %s2974_s8 = int_to_ptr.vmem [resolvable:$false] %s2973_s8 }
 0x249   : > { %p2971_p6 = pnand %p2970_p3, %p3901_p10  ;;  %s2975_s16 = scalar_lea.vmem %s2974_s8, 1024 }
 0x24a   : > { %p2976_p12 = scmp.lt.s32.totalorder %s3698_s30, %s2974_s8  ;;  %p2977_p0 = scmp.lt.s32.totalorder %s2975_s16, %s2969_s19 }
 0x24b   : > { %p2972_p8 = pneg %p2971_p6 }
 0x24c   : > { %p2978_p11 = por %p2977_p0, %p2976_p12 }
 0x24e   : > { %p2979_p1 = pnand %p2978_p11, %p2972_p8 }
 0x250   : > { %2982 = shalt.err (!%p2979_p1)
}
 0x251   : > { %s2983_s9 = scalar_lea.hbm %s3714_s24, 512  ;;  %s2987_s22 = scalar_lea.hbm %s3900_s18, 1024 }
 0x252   : > { %p2984_p9 = scmp.ne.s32.totalorder %s3714_s24, %s2983_s9  ;;  %p2988_p5 = scmp.lt.u32.totalorder %s3714_s24, %s3900_s18 }
 0x253   : > { %p2989_p13 = scmp.lt.u32.totalorder %s2987_s22, %s2983_s9  ;;  %p2991_p3 = scmp.lt.u32.totalorder %s2983_s9, %s3714_s24 }
 0x254   : > { %p2985_p4 = pnand %p2984_p9, %p3901_p10 }
 0x255   : > { %p2990_p7 = por %p2989_p13, %p2988_p5 }
 0x256   : > { %p2986_p2 = pneg %p2985_p4 }
 0x257   : > { %p2992_p6 = por %p2991_p3, %p2990_p7 }
 0x259   : > { %p2993_p8 = pnand %p2992_p6, %p2986_p2 }
 0x25b   : > { %2996 = shalt.err (!%p2993_p8)
}
 0x25c   : > { %2730 = dma.vmem_to_hbm [thread:$0]  (%p3901_p10), %s3698_s30, 512, %s3714_s24, %s1983_s27, %s3106_s6, %s3106_s6, %s3107_s21   ;;  %v1948_v14 = vpop.permute.xlu0 %1947 }
 0x25d   : > { %2271 = vst.msk [vmem:[%s3685_s10 + $0x8] sm:$0xff] %vm1930_vm2, %v1948_v14  ;;  %s2041_s28 = sshll.u32 %s3685_s10, 4  ;;  %s3902_s12 = sld [smem:[#allocation29_spill]]  ;;  %s3780_s28 = int_to_ptr.vmem [resolvable:$true] %s2041_s28 }
 0x25e   : > { %s2997_s30 = scalar_lea.vmem %s3780_s28, 512  ;;  %s3109_s24 = smov [#allocation13]  }
 0x25f   : > { %p2998_p12 = scmp.ne.s32.totalorder %s3780_s28, %s2997_s30  ;;  %s3001_s27 = sshll.u32 %s3109_s24, 4  ;;  %s3002_s27 = int_to_ptr.vmem [resolvable:$false] %s3001_s27 }
 0x260   : > { %v1963_v15 = vpop.permute.xlu0 %1962  ;;  %s3003_s20 = scalar_lea.vmem %s3002_s27, 1024  ;;  %p3004_p1 = scmp.lt.s32.totalorder %s3780_s28, %s3002_s27 }
 0x261   : > { %2274 = vst.msk [vmem:[%s3685_s10 + $0x10] sm:$0xff] %vm1930_vm2, %v1963_v15  ;;  %p2999_p0 = pnand %p2998_p12, %p3901_p10  ;;  %p3005_p9 = scmp.lt.s32.totalorder %s3003_s20, %s2997_s30 }
 0x263   : > { %s3786_s19 = scalar_lea.hbm %s3902_s12, %s3696_s17  ;;  %p3000_p11 = pneg %p2999_p0 }
 0x264   : > { %v1978_v16 = vpop.permute.xlu0 %1977  ;;  %p3006_p4 = por %p3005_p9, %p3004_p1 }
 0x265   : > { %2277 = vst.msk [vmem:[%s3685_s10 + $0x18] sm:$0xff] %vm1930_vm2, %v1978_v16 }
 0x266   : > { %p3007_p2 = pnand %p3006_p4, %p3000_p11 }
 0x268   : > { %3010 = shalt.err (!%p3007_p2)
}
 0x269   : > { %s3011_s10 = scalar_lea.hbm %s3786_s19, 512  ;;  %s3015_s16 = scalar_lea.hbm %s3902_s12, 1024 }
 0x26a   : > { %p3012_p5 = scmp.ne.s32.totalorder %s3786_s19, %s3011_s10  ;;  %p3016_p3 = scmp.lt.u32.totalorder %s3786_s19, %s3902_s12 }
 0x26b   : > { %p3017_p6 = scmp.lt.u32.totalorder %s3015_s16, %s3011_s10  ;;  %p3019_p12 = scmp.lt.u32.totalorder %s3011_s10, %s3786_s19 }
 0x26c   : > { %p3013_p13 = pnand %p3012_p5, %p3901_p10 }
 0x26d   : > { %p3018_p8 = por %p3017_p6, %p3016_p3 }
 0x26e   : > { %p3014_p7 = pneg %p3013_p13 }
 0x26f   : > { %p3020_p0 = por %p3019_p12, %p3018_p8 }
 0x271   : > { %p3021_p11 = pnand %p3020_p0, %p3014_p7 }
 0x273   : > { %3024 = shalt.err (!%p3021_p11)
}
 0x274   : > { %2732 = dma.vmem_to_hbm [thread:$0]  (%p3901_p10), %s3780_s28, 512, %s3786_s19, %s3721_s14, %s3106_s6, %s3106_s6, %s3107_s21  }
 0x275 PF: > { %s3903_s1 = sld [smem:[#allocation19_spill]]  ;;  %s3904_s22 = sld [smem:[#allocation25_spill]] }
 0x276   : > { %s3905_s13 = sld [smem:[#allocation21_spill]] }
 0x27b   : > { %s2056_s29 = sand.u32 1, %s3903_s1   ;;  %p3906_p1 = scmp.ne.s32.totalorder %s3904_s22, 0 }
 0x27c   : > { %p3907_p9 = scmp.ge.s32.totalorder %s3905_s13, 2  ;;  %s2057_s11 = scalar_lea.sflag [#allocation4], %s2056_s29 }
 0x27e   : > { %p2751_p4 = pnand %p3907_p9, %p3906_p1 }
 0x280   : > { %3062 = dma.done.wait (!%p2751_p4), %s2057_s11, 512  }
 0x281   : > { %3064 = vsyncadd (!%p2751_p4), %s2057_s11, 4294966784  ;;  %s3908_s7 = sadd.s32 4294967294, %s3905_s13  }
 0x282   : > { %s2065_s23 = sand.u32 1, %s3908_s7  }
 0x283   : > { %s2066_s30 = scalar_lea.sflag [#allocation12], %s2065_s23 }
 0x284   : > { %3066 = dma.done.wait (!%p2751_p4), %s2066_s30, 1024  }
 0x285   : > { %3068 = vsyncadd (!%p2751_p4), %s2066_s30, 4294966272  ;;  %s31_s29 = sadd.s32 1, %s3905_s13   ;;  %s3909_s14 = sld [smem:[#allocation23_spill]] }
 0x286   : > { %p28_p10 = scmp.ge.s32.totalorder %s31_s29, 4   ;;  %s3910_s27 = sld [smem:[#allocation20_spill]] }
 0x287   : > { %s3911_s28 = sld [smem:[#allocation22_spill]]  ;;  %s3912_s24 = smov %s3075_s25 }
 0x288   : > { %s3913_s25 = smov %s3079_s26  ;;  %30 = sbr.rel (!%p28_p10) target bundleno = 16 (0x10), region = 158 }
 0x28b   : > { %s3914_s26 = smov %s3909_s14 }
 0x28f   :  { %2080 = vsyncpa [#allocation3], 1 }
 0x290   :  { %2082 = vsyncpa [#allocation3 + $0x1], 1 }
 0x291   :  { %2083 = vsyncpa [#allocation6], 1 }
 0x292   :  { %2085 = vsyncpa [#allocation6 + $0x1], 1 }
 0x293   :  { %2086 = vsyncpa [#allocation9], 1 }
 0x294   :  { %2087 = vsyncpa [#allocation4], 1 }
 0x295   :  { %2089 = vsyncpa [#allocation4 + $0x1], 1 }
 0x296   :  { %2090 = vsyncpa [#allocation12], 1 }
 0x297   :  { %2092 = vsyncpa [#allocation12 + $0x1], 1 }

</bundles_post_ra>
